<compile_context>
chip_gen: v6e
topology: v6e:2x2x1
jax: 0.10.0
libtpu: 0.0.40
codegen_flags: <defaults>
</compile_context>

<pallas_src>
import functools
import numpy as np
import jax
import jax.numpy as jnp
from jax.experimental import pallas as pl
from jax.experimental.pallas import tpu as pltpu

B_BITS = 4


def quant_kernel(x_ref, w_ref, o_ref, *, B):
    x = x_ref[...]                                   # (tb, fn) f32
    step = float(2 ** B)
    q = jnp.round(x * step - 0.5)                    # half-to-even, same as torch.round
    # torch's .type(torch.uint8): wrap mod 256 (integer AND) for the intended domain.
    q_i = q.astype(jnp.int32) & 255                  # 0..255
    q_bf = q_i.astype(jnp.bfloat16)                  # integers <= 255: exact in bf16
    # Block-diagonal "stretch + scale": w[c, c*B + j] = 2^-(B-1-j), so
    #   scaled[:, c*B + j] = q[:, c] * 2^-(B-1-j)   (exact in the f32 accumulator).
    scaled = jnp.dot(q_bf, w_ref[...], preferred_element_type=jnp.float32)  # (tb, fn*B)
    # floor(q / 2^k) & 1 == bit k of q; scaled >= 0 so int truncation == floor.
    bits = scaled.astype(jnp.int32) & 1
    o_ref[...] = bits.astype(jnp.float32)


def _device_kind():
    try:
        return jax.devices()[0].device_kind.lower()
    except Exception:
        return ""


def _pick_fn(n, kind):
    """Feature-block size: match the MXU contraction width (128 on v5*, 256 on
    v6e/v7x). Falls back to fn = n (single dense block) for small / odd n."""
    prefs = (128, 256) if "v5" in kind else (256, 128)
    for fn in prefs:
        if n >= fn and n % fn == 0:
            return fn
    return n


def _pick_tb(b, fn, B, kind):
    """Batch tile from a VMEM working-set budget. Per row the pipeline needs
    ~2*fn*4 (x, double-buffered) + 2*fn*B*4 (out, double-buffered) + ~3*fn*B*4
    (in-kernel temporaries). Only v7x (2 TensorCores) prefers >=2 grid steps,
    and only when each half keeps >= 512 rows."""
    bytes_per_row = 2 * fn * 4 + 2 * fn * B * 4 + 3 * fn * B * 4
    is_v7x = ("v7" in kind) or ("7x" in kind)
    budget = (6 << 20) if is_v7x else (12 << 20)
    cap = max(8, budget // bytes_per_row)

    divisors = [t for t in range(1, b + 1) if b % t == 0 and (t % 8 == 0 or t == b)]
    fits = [t for t in divisors if t <= cap] or [min(divisors)]
    tb = max(fits)
    if is_v7x and b // tb < 2:
        halves = [t for t in fits if b // t >= 2 and t >= 512]
        if halves:
            tb = max(halves)
    return tb


def quantization_layer(x, B=B_BITS, tb=None, fn=None):
    assert x.ndim == 2, "QuantizationLayer expects (batch, features)"
    assert 1 <= B <= 8, "uint8 wrap / bf16-exactness argument requires B <= 8"
    b, n = x.shape
    kind = _device_kind()
    if fn is None:
        fn = _pick_fn(n, kind)
    assert n % fn == 0 and (fn % 128 == 0 or fn == n)
    if tb is None:
        tb = _pick_tb(b, fn, B, kind)
    assert b % tb == 0
    # Note: (fn*B) % 128 == 0 keeps output stores unmasked; at B=4 this means
    # n % 32 == 0 when fn == n. Odd n is still correct, just masked stores.

    # Single diagonal block of kron(eye(n), scales): (fn, fn*B) bf16 (powers of two
    # 2^-(B-1) .. 2^0 are exact in bf16).  Fetched into VMEM once (constant index_map).
    scales = 2.0 ** (np.arange(B, dtype=np.float64) - (B - 1))            # (B,)
    w_np = np.kron(np.eye(fn, dtype=np.float64), scales[None, :])         # (fn, fn*B)
    w = jnp.asarray(w_np, dtype=jnp.bfloat16)

    kernel = functools.partial(quant_kernel, B=B)
    return pl.pallas_call(
        kernel,
        out_shape=jax.ShapeDtypeStruct((b, n * B), jnp.float32),
        grid_spec=pl.GridSpec(
            grid=(b // tb, n // fn),
            in_specs=[
                pl.BlockSpec((tb, fn), lambda i, j: (i, j)),        # batch x feature tile
                pl.BlockSpec((fn, fn * B), lambda i, j: (0, 0)),    # constant block
            ],
            out_specs=pl.BlockSpec((tb, fn * B), lambda i, j: (i, j)),
        ),
        compiler_params=pltpu.CompilerParams(
            dimension_semantics=("parallel", "parallel"),
            vmem_limit_bytes=32 * 1024 * 1024,
        ),
    )(x, w)


def _reference(x_np, B):
    # pure-numpy replica of torch Quantization.forward / Num2Bit
    step = 2 ** B
    q = np.round(x_np * step - 0.5)
    q = q.astype(np.uint8).astype(np.int64)
    exps = np.arange(B - 1, -1, -1)
    bits = (q[:, :, None] >> exps[None, None, :]) & 1
    return bits.reshape(x_np.shape[0], x_np.shape[1] * B).astype(np.float32)


# TODO(synk): only the forward pass is implemented; the custom straight-through
# backward of Quantization (grad averaging over B bit columns) is not a kernel here.

if __name__ == "__main__":
    key = jax.random.PRNGKey(0)

    # Small shape matching the module's 2-D input (batch, features), values in [0, 1).
    batch, feat = 16, 32
    x = jax.random.uniform(key, (batch, feat), dtype=jnp.float32)
    out = jax.block_until_ready(quantization_layer(x, B=B_BITS))
    np.testing.assert_allclose(np.asarray(out), _reference(np.asarray(x), B_BITS),
                               atol=0.0, rtol=0.0)

    # Also exercise the feature-block-tiled path (fn < n) and a larger batch tile.
    x2 = jax.random.uniform(jax.random.PRNGKey(1), (64, 512), dtype=jnp.float32)
    out2 = jax.block_until_ready(quantization_layer(x2, B=B_BITS))
    np.testing.assert_allclose(np.asarray(out2), _reference(np.asarray(x2), B_BITS),
                               atol=0.0, rtol=0.0)

    print("KERNEL_OK")
</pallas_src>

<mosaic_0001>
module attributes {stable_mosaic.version = 11 : i64} {
  func.func @quant_kernel(%arg0: i32, %arg1: i32, %arg2: memref<16x32xf32, #tpu.memory_space<vmem>>, %arg3: memref<32x128xbf16, #tpu.memory_space<vmem>>, %arg4: memref<16x128xf32, #tpu.memory_space<vmem>>) attributes {dimension_semantics = [#tpu.dimension_semantics<parallel>, #tpu.dimension_semantics<parallel>], iteration_bounds = array<i64: 1, 1>, scalar_prefetch = 0 : i64, scratch_operands = 0 : i64, tpu.core_type = #tpu.core_type<tc>, window_params = [{transform_indices = @transform_0, window_bounds = array<i64: 16, 32>}, {pipeline_mode = #tpu.pipeline_mode<synchronous>, transform_indices = @transform_1, window_bounds = array<i64: 32, 128>}, {transform_indices = @transform_2, window_bounds = array<i64: 16, 128>}]} {
    %c0 = arith.constant 0 : index
    %c0_0 = arith.constant 0 : index
    %0 = vector.load %arg2[%c0, %c0_0] : memref<16x32xf32, #tpu.memory_space<vmem>>, vector<16x32xf32>
    %cst = arith.constant 1.600000e+01 : f32
    %1 = vector.broadcast %cst : f32 to vector<16x32xf32>
    %2 = arith.mulf %0, %1 : vector<16x32xf32>
    %cst_1 = arith.constant 5.000000e-01 : f32
    %3 = vector.broadcast %cst_1 : f32 to vector<16x32xf32>
    %4 = arith.subf %2, %3 : vector<16x32xf32>
    %5 = math.roundeven %4 : vector<16x32xf32>
    %6 = arith.fptosi %5 : vector<16x32xf32> to vector<16x32xi32>
    %c255_i32 = arith.constant 255 : i32
    %7 = vector.broadcast %c255_i32 : i32 to vector<16x32xi32>
    %8 = arith.andi %6, %7 : vector<16x32xi32>
    %9 = arith.sitofp %8 : vector<16x32xi32> to vector<16x32xbf16>
    %c0_2 = arith.constant 0 : index
    %c0_3 = arith.constant 0 : index
    %10 = vector.load %arg3[%c0_2, %c0_3] : memref<32x128xbf16, #tpu.memory_space<vmem>>, vector<32x128xbf16>
    %cst_4 = arith.constant dense<0.000000e+00> : vector<16x128xf32>
    %11 = tpu.matmul %9, %10, %cst_4 {dimension_numbers = #tpu.dot_dimension_numbers<[1], [0], [0], [1], [0, 0, 1, 1], [], []>} : vector<16x32xbf16>, vector<32x128xbf16>, vector<16x128xf32> -> vector<16x128xf32>
    %12 = arith.fptosi %11 : vector<16x128xf32> to vector<16x128xi32>
    %c1_i32 = arith.constant 1 : i32
    %13 = vector.broadcast %c1_i32 : i32 to vector<16x128xi32>
    %14 = arith.andi %12, %13 : vector<16x128xi32>
    %15 = arith.sitofp %14 : vector<16x128xi32> to vector<16x128xf32>
    %c0_5 = arith.constant 0 : index
    %c0_6 = arith.constant 0 : index
    %16 = vector.load %arg4[%c0_5, %c0_6] : memref<16x128xf32, #tpu.memory_space<vmem>>, vector<16x128xf32>
    tpu.vector_store %arg4[%c0_5, %c0_6], %15 {strides = array<i32>} : memref<16x128xf32, #tpu.memory_space<vmem>>, vector<16x128xf32>,
    return
  }
  func.func @transform_0(%arg0: i32, %arg1: i32) -> (i32, i32) {
    %c0_i32 = arith.constant 0 : i32
    return %arg0, %arg1 : i32, i32
  }
  func.func @transform_1(%arg0: i32, %arg1: i32) -> (i32, i32) {
    %c0_i32 = arith.constant 0 : i32
    %c0_i32_0 = arith.constant 0 : i32
    %c0_i32_1 = arith.constant 0 : i32
    return %c0_i32, %c0_i32_0 : i32, i32
  }
  func.func @transform_2(%arg0: i32, %arg1: i32) -> (i32, i32) {
    %c0_i32 = arith.constant 0 : i32
    return %arg0, %arg1 : i32, i32
  }
}

</mosaic_0001>

<bundles_post_ra>
// kernel: tpu_custom_call.1
= control target key start
LH: loop header
LB: loop body
LE: loop exit
PB: predicated region body
PF: predicated region fallthrough
CT: control target
= control target key end

     0   :  { %7 = vsyncpa [#allocation3], 0  ;;  %s283_s0 = inlined_call_operand.hbm [shape: f32[16,32], index: 0, kind: input, shape index: {}]   ;;  %s284_s1 = inlined_call_operand.hbm [shape: bf16[32,128], index: 1, kind: input, shape index: {}]   ;;  %s285_s2 = inlined_call_operand.hbm [shape: f32[16,128], index: 2, kind: output, shape index: {}]  }
   0x1   :  { %8 = vsyncpa [#allocation6], 0 }
   0x2   :  { %9 = vsyncpa [#allocation4], 0  ;;  %s244_s9 = smov [#allocation2]  }
   0x3   :  { %s15_s10 = sshll.u32 %s244_s9, 4  ;;  %s16_s10 = int_to_ptr.vmem [resolvable:$true] %s15_s10 }
   0x4   :  { %s186_s11 = scalar_lea.vmem %s16_s10, 256  ;;  %p191_p1 = scmp.lt.s32.totalorder %s16_s10, %s16_s10 }
   0x5   :  { %p187_p0 = scmp.ne.s32.totalorder %s16_s10, %s186_s11  ;;  %p192_p2 = scmp.lt.s32.totalorder %s186_s11, %s186_s11 }
   0x7   :  { %p193_p3 = por %p192_p2, %p191_p1 }
   0x9   :  { %p194_p4 = pnand %p193_p3, %p187_p0 }
   0xb   :  { %197 = shalt.err (!%p194_p4)
}
   0xc   :  { %s245_s12 = smov 128   ;;  %s246_s13 = smov 8  }
   0xd   :  { %21 = dma.hbm_to_vmem [thread:$0]  %s283_s0, 256, %s16_s10, [#allocation3], %s245_s12, %s245_s12, %s246_s13  }
   0xe   :  { %s247_s16 = smov [#allocation5]  }
   0xf   :  { %s27_s17 = sshll.u32 %s247_s16, 4  ;;  %s28_s17 = int_to_ptr.vmem [resolvable:$true] %s27_s17 }
  0x10   :  { %s206_s18 = scalar_lea.vmem %s28_s17, 256  ;;  %p211_p6 = scmp.lt.s32.totalorder %s28_s17, %s28_s17 }
  0x11   :  { %p207_p5 = scmp.ne.s32.totalorder %s28_s17, %s206_s18  ;;  %p212_p7 = scmp.lt.s32.totalorder %s206_s18, %s206_s18 }
  0x13   :  { %p213_p8 = por %p212_p7, %p211_p6 }
  0x15   :  { %p214_p9 = pnand %p213_p8, %p207_p5 }
  0x17   :  { %217 = shalt.err (!%p214_p9)
}
  0x18   :  { %s248_s19 = smov 64   ;;  %s249_s20 = smov 4  }
  0x19   :  { %33 = dma.hbm_to_vmem [thread:$0]  %s284_s1, 256, %s28_s17, [#allocation6], %s248_s19, %s248_s19, %s249_s20  }
  0x1a   :  { %238 = dma.done.wait [#allocation3], 256  }
  0x1b   :  { %239 = vsyncadd [#allocation3], 4294967040 }
  0x1c   :  { %240 = dma.done.wait [#allocation6], 256  }
  0x1d   :  { %241 = vsyncadd [#allocation6], 4294967040  ;;  %v250_v0 = vmov 0.0   ;;  %vm251_vm0 = vmmov 0   ;;  %v176_v1 = vld [vmem:[#allocation5 + $0x8] sm:$0xff]   ;;  %v177_v2 = vld [vmem:[#allocation5] sm:$0xff]  }
  0x1e   :  { %149 = vmatprep.subr.bf16.mxu0 %v250_v0  ;;  %153 = vmatprep.mubr.msk.bf16.mxu0 %vm251_vm0, %v250_v0  ;;  %v41_v3 = vld [vmem:[#allocation2] sm:$0xff]  ;;  %v42_v4 = vld [vmem:[#allocation2 + $0x8] sm:$0xff]  ;;  %vm70_vm1 = vcmask 261120   ;;  %s252_s0 = smov [#allocation7]  }
  0x1f   :  { %150 = vmatpush3.bf16.msra.mxu0 %v176_v1  ;;  %v43_v5 = vmul.f32 16.0, %v41_v3  ;;  %v44_v6 = vmul.f32 16.0, %v42_v4  ;;  %s128_s1 = sshll.u32 %s252_s0, 4  ;;  %s129_s1 = int_to_ptr.vmem [resolvable:$true] %s128_s1 }
  0x20   :  { %151 = vmatprep.subr.bf16.mxu0 %v250_v0  ;;  %s218_s23 = scalar_lea.vmem %s129_s1, 256  ;;  %p223_p11 = scmp.lt.s32.totalorder %s129_s1, %s129_s1 }
  0x21   :  { %v141_v7 = vadd.f32 -0.5, %v43_v5  ;;  %v142_v8 = vadd.f32 -0.5, %v44_v6  ;;  %p219_p10 = scmp.ne.s32.totalorder %s129_s1, %s218_s23  ;;  %p224_p12 = scmp.lt.s32.totalorder %s218_s23, %s218_s23 }
  0x23   :  { %152 = vmatpush3.bf16.msra.mxu0 %v177_v2  ;;  %v159_v9 = vcvt.f32.s32 %v141_v7  ;;  %v162_v10 = vcvt.f32.s32 %v142_v8  ;;  %p225_p13 = por %p224_p12, %p223_p11 }
  0x25   :  { %v49_v11 = vand.u32 255, %v159_v9  ;;  %v50_v12 = vand.u32 255, %v162_v10  ;;  %p226_p0 = pnand %p225_p13, %p219_p10 }
  0x27   :  { %v51_v13 = vcvt.s32.f32 %v49_v11  ;;  %v52_v14 = vcvt.s32.f32 %v50_v12 }
  0x29   :  { %v53_v15 = vpack.c.bf16 %v52_v14, %v51_v13 }
  0x2b   :  { %154 = vmatmul.mubr.msk.bf16.vlgmr.msra.gmra.mxu0 %vm70_vm1, %v53_v15 }
  0xeb   :  { %v108_v16 = vpop.f32.mrf.mxu0 }
  0xec   :  { %v163_v17 = vtrunc.f32 %v108_v16 }
  0xed   :  { %v155_v18 = vpop.f32.mrf.mxu0 }
  0xee   :  { %v164_v19 = vcvt.f32.s32 %v163_v17 }
  0xef   :  { %v111_v20 = vpop.f32.mrf.mxu0 }
  0xf0   :  { %v117_v21 = vand.u32 1, %v164_v19  ;;  %v165_v22 = vtrunc.f32 %v111_v20 }
  0xf1   :  { %v156_v23 = vpop.f32.mrf.mxu0 }
  0xf2   :  { %v119_v24 = vcvt.s32.f32 %v117_v21  ;;  %v166_v25 = vcvt.f32.s32 %v165_v22 }
  0xf4   :  { %121 = vst [vmem:[#allocation7] sm:$0xff] %v119_v24  ;;  %v118_v26 = vand.u32 1, %v166_v25 }
  0xf6   :  { %v120_v27 = vcvt.s32.f32 %v118_v26 }
  0xf8   :  { %122 = vst [vmem:[#allocation7 + $0x8] sm:$0xff] %v120_v27 }
  0xf9   :  { %229 = shalt.err (!%p226_p0)
}
  0xfa   :  { %134 = dma.vmem_to_hbm [thread:$0]  %s129_s1, 256, %s285_s2, [#allocation4], %s245_s12, %s245_s12, %s246_s13  }
  0xfb   :  { %242 = dma.done.wait [#allocation4], 256  }
  0xfc   :  { %243 = vsyncadd [#allocation4], 4294967040 }
  0xfd   :  { %138 = vsyncpa [#allocation3], 1 }
  0xfe   :  { %139 = vsyncpa [#allocation6], 1 }
  0xff   :  { %140 = vsyncpa [#allocation4], 1 }

</bundles_post_ra>
